<compile_context>
chip_gen: v5e
topology: v5e:2x2
jax: 0.10.0
libtpu: 0.0.40
codegen_flags: <defaults>
</compile_context>

<pallas_src>
import functools
import math

import jax
import jax.numpy as jnp
from jax.experimental import pallas as pl
from jax.experimental.pallas import tpu as pltpu

LANE = 128


def _rup(x, m):
    return ((x + m - 1) // m) * m


def _pad_dim(d):
    return max(LANE, _rup(d, LANE))


def _pad2(a, rows, cols):
    return jnp.pad(a, ((0, rows - a.shape[0]), (0, cols - a.shape[1])))


# ----------------------------------------------------------------------------
# Capability probe: can this build single-buffer constant-index inputs?
# ----------------------------------------------------------------------------
@functools.lru_cache(maxsize=None)
def _weight_pipeline_mode():
    """Return pl.Buffered(1) if supported (single-buffer VMEM-resident weights),
    else None (default double-buffering)."""
    def _probe_kernel(x_ref, o_ref):
        o_ref[...] = x_ref[...] * 2.0

    try:
        mode = pl.Buffered(1)
        x = jnp.ones((8, LANE), jnp.float32)
        out = pl.pallas_call(
            _probe_kernel,
            out_shape=jax.ShapeDtypeStruct((8, LANE), jnp.float32),
            grid=(1,),
            in_specs=[pl.BlockSpec((8, LANE), lambda i: (0, 0),
                                   pipeline_mode=mode)],
            out_specs=pl.BlockSpec((8, LANE), lambda i: (0, 0)),
        )(x)
        out.block_until_ready()
        return mode
    except Exception:
        return None


# ----------------------------------------------------------------------------
# Pallas kernel
# ----------------------------------------------------------------------------
def _qnet_kernel(n_state, n_action, n_joint, state_ref, action_ref, *refs):
    """Fused QNetworkContinnous forward on one (tile_b, ...) batch tile.

    Ref order after state_ref / action_ref:
      (w, b) * n_state                    # state branch layers
      (w, b) * n_action                   # action branch layers
      w0s, w0a, b0                        # first joint layer (split weight)
      (w, b) * (n_joint - 1)              # remaining joint layers
      wq_row, bq                          # Q head (row vector + scalar bias)
      out                                 # (tile_b, 1) f32 output block
    """
    refs = list(refs)
    pos = 0

    def pop(n):
        nonlocal pos
        vals = refs[pos:pos + n]
        pos += n
        return vals

    def dense(h, w_ref, b_ref):
        # bf16 operands -> MXU, f32 accumulate; bias add + ReLU in f32;
        # carry the activation in bf16 between layers.
        y = jnp.dot(h, w_ref[...], preferred_element_type=jnp.float32) + b_ref[...]
        return jnp.maximum(y, 0.0).astype(jnp.bfloat16)

    hs = state_ref[...]                 # bf16 (tile_b, state_size)
    for _ in range(n_state):
        w, b = pop(2)
        hs = dense(hs, w, b)

    ha = action_ref[...]                # bf16 (tile_b, action_size)
    for _ in range(n_action):
        w, b = pop(2)
        ha = dense(ha, w, b)

    # First joint layer: the concat is folded into a split weight.
    w0s, w0a, b0 = pop(3)
    z = jnp.dot(hs, w0s[...], preferred_element_type=jnp.float32)
    z = z + jnp.dot(ha, w0a[...], preferred_element_type=jnp.float32)
    h = jnp.maximum(z + b0[...], 0.0).astype(jnp.bfloat16)

    for _ in range(n_joint - 1):
        w, b = pop(2)
        h = dense(h, w, b)

    # Q head: single real output column -> VPU mul + XLU lane-reduce,
    # stored as a narrow (tile_b, 1) f32 column (no padded writeback slab).
    wq_row, bq = pop(2)
    (out_ref,) = pop(1)
    q = jnp.sum(h.astype(jnp.float32) * wq_row[...], axis=-1, keepdims=True)
    out_ref[...] = q + bq[...]


# ----------------------------------------------------------------------------
# Parameter construction (deterministic, mimics nn.Linear default init)
# ----------------------------------------------------------------------------
def _linear_params(key, in_dim, out_dim):
    kw, kb = jax.random.split(key)
    bound = 1.0 / jnp.sqrt(jnp.float32(in_dim))
    # stored as (in, out) so forward computes x @ W + b
    w = jax.random.uniform(kw, (in_dim, out_dim), jnp.float32, -bound, bound)
    b = jax.random.uniform(kb, (1, out_dim), jnp.float32, -bound, bound)
    return w, b


def init_qnet_params(key, state_size, state_dim, action_size, action_dim, layers_dim):
    params = {"state": [], "action": [], "joint": [], "q": None}
    keys = jax.random.split(key, len(state_dim) + len(action_dim) + len(layers_dim) + 1)
    k = 0

    prev = state_size
    for d in state_dim:
        params["state"].append(_linear_params(keys[k], prev, d)); k += 1
        prev = d
    last_state_dim = prev

    prev = action_size
    for d in action_dim:
        params["action"].append(_linear_params(keys[k], prev, d)); k += 1
        prev = d
    last_action_dim = prev

    prev = last_state_dim + last_action_dim
    for d in layers_dim:
        params["joint"].append(_linear_params(keys[k], prev, d)); k += 1
        prev = d

    params["q"] = _linear_params(keys[k], layers_dim[-1], 1)
    return params


# ----------------------------------------------------------------------------
# Pack raw params into lane-aligned bf16 kernel weights
# ----------------------------------------------------------------------------
def _pack_params(params, state_size, action_size):
    assert len(params["joint"]) >= 1, "layers_dim must be non-empty (fc_Q needs it)"

    def pad_w(w, rows, cols):
        return _pad2(w, rows, cols).astype(jnp.bfloat16)

    def pad_b(b, cols):
        return _pad2(b, 1, cols)                      # stays f32

    def branch(layers, in_size):
        packed, prev = [], in_size                    # first in-dim is unpadded
        for w, b in layers:
            opad = _pad_dim(w.shape[1])
            packed.append((pad_w(w, prev, opad), pad_b(b, opad)))
            prev = opad
        last_real = layers[-1][0].shape[1] if layers else in_size
        return packed, prev, last_real                # (layers, lane width of h, true dim)

    state_p, s_width, last_s = branch(params["state"], state_size)
    action_p, a_width, last_a = branch(params["action"], action_size)

    # First joint layer: split W0 into state rows and action rows, placed at
    # the lane offsets of the (possibly padded) branch outputs.
    w0, b0 = params["joint"][0]
    j0 = w0.shape[1]
    j0_pad = _pad_dim(j0)
    w0s = jnp.zeros((s_width, j0_pad), jnp.float32)
    w0s = w0s.at[:last_s, :j0].set(w0[:last_s, :])
    w0a = jnp.zeros((a_width, j0_pad), jnp.float32)
    w0a = w0a.at[:last_a, :j0].set(w0[last_s:, :])
    b0p = pad_b(b0, j0_pad)

    joint_rest, prev = [], j0_pad
    for w, b in params["joint"][1:]:
        opad = _pad_dim(w.shape[1])
        joint_rest.append((pad_w(w, prev, opad), pad_b(b, opad)))
        prev = opad

    # Q head: single real column, pre-rounded to bf16 so the kernel's
    # VPU/XLU reduce matches a bf16 MXU reference bit-for-bit (mod sum order).
    qw, qb = params["q"]
    wq_row = jnp.zeros((1, prev), jnp.float32)
    wq_row = wq_row.at[0, :qw.shape[0]].set(
        qw[:, 0].astype(jnp.bfloat16).astype(jnp.float32))
    bq = qb.reshape(1, 1).astype(jnp.float32)

    inputs = []
    for w, b in state_p:
        inputs += [w, b]
    for w, b in action_p:
        inputs += [w, b]
    inputs += [w0s.astype(jnp.bfloat16), w0a.astype(jnp.bfloat16), b0p]
    for w, b in joint_rest:
        inputs += [w, b]
    inputs += [wq_row, bq]

    meta = dict(n_state=len(state_p), n_action=len(action_p),
                n_joint=len(params["joint"]),
                max_width=max(s_width, a_width, j0_pad, prev, LANE))
    return inputs, meta


# ----------------------------------------------------------------------------
# Batch tiling: big tiles (amortize ~0.35us/step overhead); even step count
# when multi-tile so ("parallel",) feeds both TensorCores on v7x.
# ----------------------------------------------------------------------------
def _choose_tile(batch):
    bp8 = _rup(batch, 8)
    if bp8 <= 512:
        return bp8                                     # single step
    steps = max(2, 2 * math.ceil(bp8 / 2048))          # even, tiles <= ~1024 rows
    return _rup(math.ceil(bp8 / steps), 8)


# ----------------------------------------------------------------------------
# Wrapper around pallas_call
# ----------------------------------------------------------------------------
def qnet_forward_pallas(state, action, params):
    batch, state_size = state.shape
    action_size = action.shape[1]
    weight_inputs, meta = _pack_params(params, state_size, action_size)

    tile_b = _choose_tile(batch)
    bp = _rup(batch, tile_b)
    grid = (bp // tile_b,)

    # Stream the raw inputs in bf16, unpadded in the feature dim (block last
    # dim == full array dim is legal); only pad the batch rows.
    sx = jnp.pad(state.astype(jnp.bfloat16), ((0, bp - batch), (0, 0)))
    ax = jnp.pad(action.astype(jnp.bfloat16), ((0, bp - batch), (0, 0)))

    wmode = _weight_pipeline_mode()                    # pl.Buffered(1) or None

    def w_spec(shape):
        if wmode is None:
            return pl.BlockSpec(shape, lambda i: (0, 0))
        return pl.BlockSpec(shape, lambda i: (0, 0), pipeline_mode=wmode)

    in_specs = [pl.BlockSpec((tile_b, state_size), lambda i: (i, 0)),
                pl.BlockSpec((tile_b, action_size), lambda i: (i, 0))]
    in_specs += [w_spec(t.shape) for t in weight_inputs]
    out_spec = pl.BlockSpec((tile_b, 1), lambda i: (i, 0))

    # Explicit VMEM budget: resident weights (+x2 if double-buffered),
    # double-buffered streamed blocks, activation headroom; floor at the
    # 32 MiB scoped default, cap at 64 MiB (v7x physical).
    w_mult = 1 if wmode is not None else 2
    resident = w_mult * sum(int(t.size) * t.dtype.itemsize for t in weight_inputs)
    streamed = 2 * tile_b * (2 * (state_size + action_size) + 4)
    act_headroom = 16 * tile_b * meta["max_width"] * 4
    vmem_limit = int(min(max(resident + streamed + act_headroom + (4 << 20),
                             32 << 20), 64 << 20))

    kernel = functools.partial(_qnet_kernel, meta["n_state"], meta["n_action"],
                               meta["n_joint"])

    out = pl.pallas_call(
        kernel,
        out_shape=jax.ShapeDtypeStruct((bp, 1), jnp.float32),
        grid=grid,
        in_specs=in_specs,
        out_specs=out_spec,
        compiler_params=pltpu.CompilerParams(
            dimension_semantics=("parallel",),
            vmem_limit_bytes=vmem_limit),
    )(sx, ax, *weight_inputs)

    return out[:batch]


# ----------------------------------------------------------------------------
# Pure-JAX reference (mirrors the PyTorch forward; compute_dtype selects the
# matmul operand precision so we can check both bf16-matched and f32)
# ----------------------------------------------------------------------------
def qnet_forward_ref(state, action, params, compute_dtype=jnp.float32):
    def dense(h, w, b, relu=True):
        y = jnp.dot(h.astype(compute_dtype), w.astype(compute_dtype),
                    preferred_element_type=jnp.float32) + b
        return jnp.maximum(y, 0.0) if relu else y

    x = state
    for w, b in params["state"]:
        x = dense(x, w, b)
    a = action
    for w, b in params["action"]:
        a = dense(a, w, b)
    h = jnp.concatenate([x, a], axis=1)
    for w, b in params["joint"]:
        h = dense(h, w, b)
    qw, qb = params["q"]
    return dense(h, qw, qb, relu=False)


def _check(out, state, action, params):
    ref_bf16 = qnet_forward_ref(state, action, params, compute_dtype=jnp.bfloat16)
    ref_f32 = qnet_forward_ref(state, action, params, compute_dtype=jnp.float32)
    assert out.shape == ref_f32.shape
    assert jnp.allclose(out, ref_bf16, atol=2e-3, rtol=2e-3), (out, ref_bf16)
    assert jnp.allclose(out, ref_f32, atol=5e-2, rtol=5e-2), (out, ref_f32)


# ----------------------------------------------------------------------------
if __name__ == "__main__":
    fwd = jax.jit(qnet_forward_pallas)

    # --- small config consistent with the module's constructor ---------------
    batch = 2
    state_size, state_dim = 16, [32, 16]
    action_size, action_dim = 8, [16]
    layers_dim = [64, 32]

    key = jax.random.PRNGKey(0)
    k_params, k_state, k_action = jax.random.split(key, 3)
    params = init_qnet_params(
        k_params, state_size, state_dim, action_size, action_dim, layers_dim)

    state = jax.random.normal(k_state, (batch, state_size), jnp.float32)
    action = jax.random.normal(k_action, (batch, action_size), jnp.float32)

    out = jax.block_until_ready(fwd(state, action, params))
    assert out.shape == (batch, 1)
    _check(out, state, action, params)

    # --- larger batch: exercises the multi-step (even) grid + row padding ----
    batch2 = 1300
    k_s2, k_a2 = jax.random.split(jax.random.PRNGKey(1))
    state2 = jax.random.normal(k_s2, (batch2, state_size), jnp.float32)
    action2 = jax.random.normal(k_a2, (batch2, action_size), jnp.float32)
    out2 = jax.block_until_ready(fwd(state2, action2, params))
    assert out2.shape == (batch2, 1)
    _check(out2, state2, action2, params)

    # --- branch with zero layers (raw action feeds the first joint layer) ----
    batch3 = 16
    params3 = init_qnet_params(
        jax.random.PRNGKey(2), state_size, [32], action_size, [], layers_dim)
    k_s3, k_a3 = jax.random.split(jax.random.PRNGKey(3))
    state3 = jax.random.normal(k_s3, (batch3, state_size), jnp.float32)
    action3 = jax.random.normal(k_a3, (batch3, action_size), jnp.float32)
    out3 = jax.block_until_ready(fwd(state3, action3, params3))
    assert out3.shape == (batch3, 1)
    _check(out3, state3, action3, params3)

    print("KERNEL_OK")
</pallas_src>

<mosaic_0001>
module attributes {stable_mosaic.version = 11 : i64} {
  func.func @_qnet_kernel(%arg0: i32, %arg1: memref<8x16xbf16, #tpu.memory_space<vmem>>, %arg2: memref<8x8xbf16, #tpu.memory_space<vmem>>, %arg3: memref<16x128xbf16, #tpu.memory_space<vmem>>, %arg4: memref<1x128xf32, #tpu.memory_space<vmem>>, %arg5: memref<128x128xbf16, #tpu.memory_space<vmem>>, %arg6: memref<1x128xf32, #tpu.memory_space<vmem>>, %arg7: memref<8x128xbf16, #tpu.memory_space<vmem>>, %arg8: memref<1x128xf32, #tpu.memory_space<vmem>>, %arg9: memref<128x128xbf16, #tpu.memory_space<vmem>>, %arg10: memref<128x128xbf16, #tpu.memory_space<vmem>>, %arg11: memref<1x128xf32, #tpu.memory_space<vmem>>, %arg12: memref<128x128xbf16, #tpu.memory_space<vmem>>, %arg13: memref<1x128xf32, #tpu.memory_space<vmem>>, %arg14: memref<1x128xf32, #tpu.memory_space<vmem>>, %arg15: memref<1x1xf32, #tpu.memory_space<vmem>>, %arg16: memref<8x1xf32, #tpu.memory_space<vmem>>) attributes {dimension_semantics = [#tpu.dimension_semantics<parallel>], iteration_bounds = array<i64: 1>, scalar_prefetch = 0 : i64, scratch_operands = 0 : i64, tpu.core_type = #tpu.core_type<tc>, window_params = [{transform_indices = @transform_0, window_bounds = array<i64: 8, 16>}, {transform_indices = @transform_1, window_bounds = array<i64: 8, 8>}, {pipeline_mode = #tpu.pipeline_mode<synchronous>, transform_indices = @transform_2, window_bounds = array<i64: 16, 128>}, {pipeline_mode = #tpu.pipeline_mode<synchronous>, transform_indices = @transform_3, window_bounds = array<i64: 1, 128>}, {pipeline_mode = #tpu.pipeline_mode<synchronous>, transform_indices = @transform_4, window_bounds = array<i64: 128, 128>}, {pipeline_mode = #tpu.pipeline_mode<synchronous>, transform_indices = @transform_5, window_bounds = array<i64: 1, 128>}, {pipeline_mode = #tpu.pipeline_mode<synchronous>, transform_indices = @transform_6, window_bounds = array<i64: 8, 128>}, {pipeline_mode = #tpu.pipeline_mode<synchronous>, transform_indices = @transform_7, window_bounds = array<i64: 1, 128>}, {pipeline_mode = #tpu.pipeline_mode<synchronous>, transform_indices = @transform_8, window_bounds = array<i64: 128, 128>}, {pipeline_mode = #tpu.pipeline_mode<synchronous>, transform_indices = @transform_9, window_bounds = array<i64: 128, 128>}, {pipeline_mode = #tpu.pipeline_mode<synchronous>, transform_indices = @transform_10, window_bounds = array<i64: 1, 128>}, {pipeline_mode = #tpu.pipeline_mode<synchronous>, transform_indices = @transform_11, window_bounds = array<i64: 128, 128>}, {pipeline_mode = #tpu.pipeline_mode<synchronous>, transform_indices = @transform_12, window_bounds = array<i64: 1, 128>}, {pipeline_mode = #tpu.pipeline_mode<synchronous>, transform_indices = @transform_13, window_bounds = array<i64: 1, 128>}, {pipeline_mode = #tpu.pipeline_mode<synchronous>, transform_indices = @transform_14, window_bounds = array<i64: 1, 1>}, {transform_indices = @transform_15, window_bounds = array<i64: 8, 1>}]} {
    %c0 = arith.constant 0 : index
    %c0_0 = arith.constant 0 : index
    %0 = vector.load %arg1[%c0, %c0_0] : memref<8x16xbf16, #tpu.memory_space<vmem>>, vector<8x16xbf16>
    %c0_1 = arith.constant 0 : index
    %c0_2 = arith.constant 0 : index
    %1 = vector.load %arg3[%c0_1, %c0_2] : memref<16x128xbf16, #tpu.memory_space<vmem>>, vector<16x128xbf16>
    %cst = arith.constant dense<0.000000e+00> : vector<8x128xf32>
    %2 = tpu.matmul %0, %1, %cst {dimension_numbers = #tpu.dot_dimension_numbers<[1], [0], [0], [1], [0, 0, 1, 1], [], []>} : vector<8x16xbf16>, vector<16x128xbf16>, vector<8x128xf32> -> vector<8x128xf32>
    %c0_3 = arith.constant 0 : index
    %c0_4 = arith.constant 0 : index
    %3 = vector.load %arg4[%c0_3, %c0_4] : memref<1x128xf32, #tpu.memory_space<vmem>>, vector<1x128xf32>
    %4 = vector.broadcast %3 : vector<1x128xf32> to vector<8x128xf32>
    %5 = arith.addf %2, %4 : vector<8x128xf32>
    %cst_5 = arith.constant 0.000000e+00 : f32
    %6 = vector.broadcast %cst_5 : f32 to vector<8x128xf32>
    %7 = arith.maximumf %5, %6 : vector<8x128xf32>
    %8 = arith.truncf %7 : vector<8x128xf32> to vector<8x128xbf16>
    %c0_6 = arith.constant 0 : index
    %c0_7 = arith.constant 0 : index
    %9 = vector.load %arg5[%c0_6, %c0_7] : memref<128x128xbf16, #tpu.memory_space<vmem>>, vector<128x128xbf16>
    %cst_8 = arith.constant dense<0.000000e+00> : vector<8x128xf32>
    %10 = tpu.matmul %8, %9, %cst_8 {dimension_numbers = #tpu.dot_dimension_numbers<[1], [0], [0], [1], [0, 0, 1, 1], [], []>} : vector<8x128xbf16>, vector<128x128xbf16>, vector<8x128xf32> -> vector<8x128xf32>
    %c0_9 = arith.constant 0 : index
    %c0_10 = arith.constant 0 : index
    %11 = vector.load %arg6[%c0_9, %c0_10] : memref<1x128xf32, #tpu.memory_space<vmem>>, vector<1x128xf32>
    %12 = vector.broadcast %11 : vector<1x128xf32> to vector<8x128xf32>
    %13 = arith.addf %10, %12 : vector<8x128xf32>
    %cst_11 = arith.constant 0.000000e+00 : f32
    %14 = vector.broadcast %cst_11 : f32 to vector<8x128xf32>
    %15 = arith.maximumf %13, %14 : vector<8x128xf32>
    %16 = arith.truncf %15 : vector<8x128xf32> to vector<8x128xbf16>
    %c0_12 = arith.constant 0 : index
    %c0_13 = arith.constant 0 : index
    %17 = vector.load %arg2[%c0_12, %c0_13] : memref<8x8xbf16, #tpu.memory_space<vmem>>, vector<8x8xbf16>
    %c0_14 = arith.constant 0 : index
    %c0_15 = arith.constant 0 : index
    %18 = vector.load %arg7[%c0_14, %c0_15] : memref<8x128xbf16, #tpu.memory_space<vmem>>, vector<8x128xbf16>
    %cst_16 = arith.constant dense<0.000000e+00> : vector<8x128xf32>
    %19 = tpu.matmul %17, %18, %cst_16 {dimension_numbers = #tpu.dot_dimension_numbers<[1], [0], [0], [1], [0, 0, 1, 1], [], []>} : vector<8x8xbf16>, vector<8x128xbf16>, vector<8x128xf32> -> vector<8x128xf32>
    %c0_17 = arith.constant 0 : index
    %c0_18 = arith.constant 0 : index
    %20 = vector.load %arg8[%c0_17, %c0_18] : memref<1x128xf32, #tpu.memory_space<vmem>>, vector<1x128xf32>
    %21 = vector.broadcast %20 : vector<1x128xf32> to vector<8x128xf32>
    %22 = arith.addf %19, %21 : vector<8x128xf32>
    %cst_19 = arith.constant 0.000000e+00 : f32
    %23 = vector.broadcast %cst_19 : f32 to vector<8x128xf32>
    %24 = arith.maximumf %22, %23 : vector<8x128xf32>
    %25 = arith.truncf %24 : vector<8x128xf32> to vector<8x128xbf16>
    %c0_20 = arith.constant 0 : index
    %c0_21 = arith.constant 0 : index
    %26 = vector.load %arg9[%c0_20, %c0_21] : memref<128x128xbf16, #tpu.memory_space<vmem>>, vector<128x128xbf16>
    %cst_22 = arith.constant dense<0.000000e+00> : vector<8x128xf32>
    %27 = tpu.matmul %16, %26, %cst_22 {dimension_numbers = #tpu.dot_dimension_numbers<[1], [0], [0], [1], [0, 0, 1, 1], [], []>} : vector<8x128xbf16>, vector<128x128xbf16>, vector<8x128xf32> -> vector<8x128xf32>
    %c0_23 = arith.constant 0 : index
    %c0_24 = arith.constant 0 : index
    %28 = vector.load %arg10[%c0_23, %c0_24] : memref<128x128xbf16, #tpu.memory_space<vmem>>, vector<128x128xbf16>
    %cst_25 = arith.constant dense<0.000000e+00> : vector<8x128xf32>
    %29 = tpu.matmul %25, %28, %cst_25 {dimension_numbers = #tpu.dot_dimension_numbers<[1], [0], [0], [1], [0, 0, 1, 1], [], []>} : vector<8x128xbf16>, vector<128x128xbf16>, vector<8x128xf32> -> vector<8x128xf32>
    %30 = arith.addf %27, %29 : vector<8x128xf32>
    %c0_26 = arith.constant 0 : index
    %c0_27 = arith.constant 0 : index
    %31 = vector.load %arg11[%c0_26, %c0_27] : memref<1x128xf32, #tpu.memory_space<vmem>>, vector<1x128xf32>
    %32 = vector.broadcast %31 : vector<1x128xf32> to vector<8x128xf32>
    %33 = arith.addf %30, %32 : vector<8x128xf32>
    %cst_28 = arith.constant 0.000000e+00 : f32
    %34 = vector.broadcast %cst_28 : f32 to vector<8x128xf32>
    %35 = arith.maximumf %33, %34 : vector<8x128xf32>
    %36 = arith.truncf %35 : vector<8x128xf32> to vector<8x128xbf16>
    %c0_29 = arith.constant 0 : index
    %c0_30 = arith.constant 0 : index
    %37 = vector.load %arg12[%c0_29, %c0_30] : memref<128x128xbf16, #tpu.memory_space<vmem>>, vector<128x128xbf16>
    %cst_31 = arith.constant dense<0.000000e+00> : vector<8x128xf32>
    %38 = tpu.matmul %36, %37, %cst_31 {dimension_numbers = #tpu.dot_dimension_numbers<[1], [0], [0], [1], [0, 0, 1, 1], [], []>} : vector<8x128xbf16>, vector<128x128xbf16>, vector<8x128xf32> -> vector<8x128xf32>
    %c0_32 = arith.constant 0 : index
    %c0_33 = arith.constant 0 : index
    %39 = vector.load %arg13[%c0_32, %c0_33] : memref<1x128xf32, #tpu.memory_space<vmem>>, vector<1x128xf32>
    %40 = vector.broadcast %39 : vector<1x128xf32> to vector<8x128xf32>
    %41 = arith.addf %38, %40 : vector<8x128xf32>
    %cst_34 = arith.constant 0.000000e+00 : f32
    %42 = vector.broadcast %cst_34 : f32 to vector<8x128xf32>
    %43 = arith.maximumf %41, %42 : vector<8x128xf32>
    %44 = arith.truncf %43 : vector<8x128xf32> to vector<8x128xbf16>
    %45 = arith.extf %44 : vector<8x128xbf16> to vector<8x128xf32>
    %c0_35 = arith.constant 0 : index
    %c0_36 = arith.constant 0 : index
    %46 = vector.load %arg14[%c0_35, %c0_36] : memref<1x128xf32, #tpu.memory_space<vmem>>, vector<1x128xf32>
    %47 = vector.broadcast %46 : vector<1x128xf32> to vector<8x128xf32>
    %48 = arith.mulf %45, %47 : vector<8x128xf32>
    %cst_37 = arith.constant dense<0.000000e+00> : vector<8xf32>
    %49 = vector.multi_reduction <add>, %48, %cst_37 [1] : vector<8x128xf32> to vector<8xf32>
    %50 = vector.shape_cast %49 : vector<8xf32> to vector<8x1xf32>
    %c0_38 = arith.constant 0 : index
    %c0_39 = arith.constant 0 : index
    %51 = vector.load %arg15[%c0_38, %c0_39] : memref<1x1xf32, #tpu.memory_space<vmem>>, vector<1x1xf32>
    %52 = vector.broadcast %51 : vector<1x1xf32> to vector<8x1xf32>
    %53 = arith.addf %50, %52 : vector<8x1xf32>
    %c0_40 = arith.constant 0 : index
    %c0_41 = arith.constant 0 : index
    %54 = vector.load %arg16[%c0_40, %c0_41] : memref<8x1xf32, #tpu.memory_space<vmem>>, vector<8x1xf32>
    tpu.vector_store %arg16[%c0_40, %c0_41], %53 {strides = array<i32>} : memref<8x1xf32, #tpu.memory_space<vmem>>, vector<8x1xf32>,
    return
  }
  func.func @transform_0(%arg0: i32) -> (i32, i32) {
    %c0_i32 = arith.constant 0 : i32
    %c0_i32_0 = arith.constant 0 : i32
    return %arg0, %c0_i32 : i32, i32
  }
  func.func @transform_1(%arg0: i32) -> (i32, i32) {
    %c0_i32 = arith.constant 0 : i32
    %c0_i32_0 = arith.constant 0 : i32
    return %arg0, %c0_i32 : i32, i32
  }
  func.func @transform_2(%arg0: i32) -> (i32, i32) {
    %c0_i32 = arith.constant 0 : i32
    %c0_i32_0 = arith.constant 0 : i32
    %c0_i32_1 = arith.constant 0 : i32
    return %c0_i32, %c0_i32_0 : i32, i32
  }
  func.func @transform_3(%arg0: i32) -> (i32, i32) {
    %c0_i32 = arith.constant 0 : i32
    %c0_i32_0 = arith.constant 0 : i32
    %c0_i32_1 = arith.constant 0 : i32
    return %c0_i32, %c0_i32_0 : i32, i32
  }
  func.func @transform_4(%arg0: i32) -> (i32, i32) {
    %c0_i32 = arith.constant 0 : i32
    %c0_i32_0 = arith.constant 0 : i32
    %c0_i32_1 = arith.constant 0 : i32
    return %c0_i32, %c0_i32_0 : i32, i32
  }
  func.func @transform_5(%arg0: i32) -> (i32, i32) {
    %c0_i32 = arith.constant 0 : i32
    %c0_i32_0 = arith.constant 0 : i32
    %c0_i32_1 = arith.constant 0 : i32
    return %c0_i32, %c0_i32_0 : i32, i32
  }
  func.func @transform_6(%arg0: i32) -> (i32, i32) {
    %c0_i32 = arith.constant 0 : i32
    %c0_i32_0 = arith.constant 0 : i32
    %c0_i32_1 = arith.constant 0 : i32
    return %c0_i32, %c0_i32_0 : i32, i32
  }
  func.func @transform_7(%arg0: i32) -> (i32, i32) {
    %c0_i32 = arith.constant 0 : i32
    %c0_i32_0 = arith.constant 0 : i32
    %c0_i32_1 = arith.constant 0 : i32
    return %c0_i32, %c0_i32_0 : i32, i32
  }
  func.func @transform_8(%arg0: i32) -> (i32, i32) {
    %c0_i32 = arith.constant 0 : i32
    %c0_i32_0 = arith.constant 0 : i32
    %c0_i32_1 = arith.constant 0 : i32
    return %c0_i32, %c0_i32_0 : i32, i32
  }
  func.func @transform_9(%arg0: i32) -> (i32, i32) {
    %c0_i32 = arith.constant 0 : i32
    %c0_i32_0 = arith.constant 0 : i32
    %c0_i32_1 = arith.constant 0 : i32
    return %c0_i32, %c0_i32_0 : i32, i32
  }
  func.func @transform_10(%arg0: i32) -> (i32, i32) {
    %c0_i32 = arith.constant 0 : i32
    %c0_i32_0 = arith.constant 0 : i32
    %c0_i32_1 = arith.constant 0 : i32
    return %c0_i32, %c0_i32_0 : i32, i32
  }
  func.func @transform_11(%arg0: i32) -> (i32, i32) {
    %c0_i32 = arith.constant 0 : i32
    %c0_i32_0 = arith.constant 0 : i32
    %c0_i32_1 = arith.constant 0 : i32
    return %c0_i32, %c0_i32_0 : i32, i32
  }
  func.func @transform_12(%arg0: i32) -> (i32, i32) {
    %c0_i32 = arith.constant 0 : i32
    %c0_i32_0 = arith.constant 0 : i32
    %c0_i32_1 = arith.constant 0 : i32
    return %c0_i32, %c0_i32_0 : i32, i32
  }
  func.func @transform_13(%arg0: i32) -> (i32, i32) {
    %c0_i32 = arith.constant 0 : i32
    %c0_i32_0 = arith.constant 0 : i32
    %c0_i32_1 = arith.constant 0 : i32
    return %c0_i32, %c0_i32_0 : i32, i32
  }
  func.func @transform_14(%arg0: i32) -> (i32, i32) {
    %c0_i32 = arith.constant 0 : i32
    %c0_i32_0 = arith.constant 0 : i32
    %c0_i32_1 = arith.constant 0 : i32
    return %c0_i32, %c0_i32_0 : i32, i32
  }
  func.func @transform_15(%arg0: i32) -> (i32, i32) {
    %c0_i32 = arith.constant 0 : i32
    %c0_i32_0 = arith.constant 0 : i32
    return %arg0, %c0_i32 : i32, i32
  }
}

</mosaic_0001>

<bundles_post_ra>
// kernel: qnet_forward_pallas.1
= control target key start
LH: loop header
LB: loop body
LE: loop exit
PB: predicated region body
PF: predicated region fallthrough
CT: control target
= control target key end

     0   :  { %vm178_vm0 = vcmask 1043456   ;;  %vm66_vm1 = vcmask 130048   ;;  %vm174_vm2 = vcmask 64512   ;;  %vm454_vm3 = vcmask 7168   ;;  %s846_s2 = inlined_call_operand.vmem [shape: bf16[16,128], index: 2, kind: input, shape index: {}]   ;;  %s847_s0 = inlined_call_operand.vmem [shape: bf16[8,16], index: 0, kind: input, shape index: {}]   ;;  %s848_s4 = inlined_call_operand.vmem [shape: bf16[128,128], index: 4, kind: input, shape index: {}]   ;;  %s849_s6 = inlined_call_operand.vmem [shape: bf16[8,128], index: 6, kind: input, shape index: {}]   ;;  %s850_s1 = inlined_call_operand.vmem [shape: bf16[8,8], index: 1, kind: input, shape index: {}]   ;;  %s851_s3 = inlined_call_operand.vmem [shape: f32[1,128], index: 3, kind: input, shape index: {}]   ;;  %s852_s7 = inlined_call_operand.vmem [shape: f32[1,128], index: 7, kind: input, shape index: {}]   ;;  %s853_s5 = inlined_call_operand.vmem [shape: f32[1,128], index: 5, kind: input, shape index: {}]   ;;  %s854_s9 = inlined_call_operand.vmem [shape: bf16[128,128], index: 9, kind: input, shape index: {}]   ;;  %s855_s8 = inlined_call_operand.vmem [shape: bf16[128,128], index: 8, kind: input, shape index: {}]   ;;  %s856_s10 = inlined_call_operand.vmem [shape: f32[1,128], index: 10, kind: input, shape index: {}]   ;;  %s857_s11 = inlined_call_operand.vmem [shape: bf16[128,128], index: 11, kind: input, shape index: {}]   ;;  %s858_s12 = inlined_call_operand.vmem [shape: f32[1,128], index: 12, kind: input, shape index: {}]   ;;  %s859_s13 = inlined_call_operand.vmem [shape: f32[1,128], index: 13, kind: input, shape index: {}]   ;;  %s860_s14 = inlined_call_operand.<no memory space> [shape: f32[1,1], index: 14, kind: input, shape index: {}]   ;;  %s861_s15 = inlined_call_operand.vmem [shape: f32[8,1], index: 15, kind: output, shape index: {}]  }
   0x1   :  { %v594_v0 = vld [vmem:[%s846_s2] sm:$0xff]  ;;  %v602_v1 = vld [vmem:[%s848_s4 + $0x38] sm:$0xff]  ;;  %v601_v4 = vld [vmem:[%s848_s4 + $0x30] sm:$0xff] }
   0x2   :  { %v169_v2 = vld [vmem:[%s849_s6] sm:$0xf]  ;;  %77 = vmatpush.bf16.msra.mxu0 %v594_v0  ;;  %153 = vmatpush.bf16.msra.mxu1 %v602_v1  ;;  %v600_v7 = vld [vmem:[%s848_s4 + $0x28] sm:$0xff]  ;;  %v598_v9 = vld [vmem:[%s848_s4 + $0x18] sm:$0xff]  ;;  %v20_v0 = vstv %s860_s14 }
   0x3   :  { %v53_v3 = vld [vmem:[%s847_s0] sm:$0xf]  ;;  %v180_v5 = vsel %vm178_vm0, %v169_v2, 0  ;;  %v597_v10 = vld [vmem:[%s848_s4 + $0x10] sm:$0xff]  ;;  %v596_v11 = vld [vmem:[%s848_s4 + $0x8] sm:$0xff] }
   0x4   :  { %189 = vmatpush.bf16.msra.mxu2 %v180_v5  ;;  %v168_v6 = vld [vmem:[%s850_s1] sm:$0xf]  ;;  %v618_v13 = vld [vmem:[%s854_s9 + $0x38] sm:$0xff]  ;;  %v617_v15 = vld [vmem:[%s854_s9 + $0x30] sm:$0xff]  ;;  %21 = vst [vmem:[#allocation2] sm:$0x1] %v20_v0 }
   0x5   :  { %464 = vmatmul.msk.bf16.vlgmr.msra.gmra.mxu0 %vm66_vm1, %v53_v3  ;;  %v599_v8 = vld [vmem:[%s848_s4 + $0x20] sm:$0xff]  ;;  %v610_v14 = vld [vmem:[%s855_s8 + $0x38] sm:$0xff]  ;;  %277 = vmatpush.bf16.msra.mxu3 %v618_v13  ;;  %v609_v16 = vld [vmem:[%s855_s8 + $0x30] sm:$0xff] }
   0x6   :  { %154 = vmatpush.bf16.msra.mxu1 %v601_v4  ;;  %v595_v12 = vld [vmem:[%s848_s4] sm:$0xff]  ;;  %338 = vmatpush.bf16.msrb.mxu0 %v610_v14  ;;  %v616_v17 = vld [vmem:[%s854_s9 + $0x28] sm:$0xff]  ;;  %v614_v21 = vld [vmem:[%s854_s9 + $0x18] sm:$0xff] }
   0x7   :  { %497 = vmatmul.msk.bf16.vlgmr.msra.gmra.mxu2 %vm174_vm2, %v168_v6  ;;  %v608_v18 = vld [vmem:[%s855_s8 + $0x28] sm:$0xff]  ;;  %v615_v19 = vld [vmem:[%s854_s9 + $0x20] sm:$0xff]  ;;  %v606_v22 = vld [vmem:[%s855_s8 + $0x18] sm:$0xff] }
   0x8   :  { %v607_v20 = vld [vmem:[%s855_s8 + $0x20] sm:$0xff]  ;;  %v613_v23 = vld [vmem:[%s854_s9 + $0x10] sm:$0xff]  ;;  %v612_v26 = vld [vmem:[%s854_s9 + $0x8] sm:$0xff] }
   0x9   :  { %278 = vmatpush.bf16.msra.mxu3 %v617_v15  ;;  %v605_v24 = vld [vmem:[%s855_s8 + $0x10] sm:$0xff]  ;;  %v627_v25 = vld [vmem:[%s851_s3] ss:$0 sm:$0xff]  ;;  %v604_v39 = vld [vmem:[%s855_s8 + $0x8] sm:$0xff] }
   0xa   :  { %155 = vmatpush.bf16.msra.mxu1 %v600_v7  ;;  %339 = vmatpush.bf16.msrb.mxu0 %v609_v16  ;;  %v611_v29 = vld [vmem:[%s854_s9] sm:$0xff]  ;;  %v626_v41 = vld [vmem:[%s857_s11 + $0x38] sm:$0xff]  ;;  %v625_v42 = vld [vmem:[%s857_s11 + $0x30] sm:$0xff] }
   0xb   :  { %v628_v31 = vld [vmem:[%s852_s7] ss:$0 sm:$0xff]  ;;  %426 = vmatpush.bf16.msrb.mxu2 %v626_v41  ;;  %v624_v43 = vld [vmem:[%s857_s11 + $0x28] sm:$0xff]  ;;  %v622_v45 = vld [vmem:[%s857_s11 + $0x18] sm:$0xff] }
   0xc   :  { %v603_v40 = vld [vmem:[%s855_s8] sm:$0xff]  ;;  %v621_v46 = vld [vmem:[%s857_s11 + $0x10] sm:$0xff]  ;;  %v620_v55 = vld [vmem:[%s857_s11 + $0x8] sm:$0xff] }
   0xd   :  { %279 = vmatpush.bf16.msra.mxu3 %v616_v17  ;;  %v623_v44 = vld [vmem:[%s857_s11 + $0x20] sm:$0xff] }
   0xe   :  { %156 = vmatpush.bf16.msra.mxu1 %v599_v8  ;;  %340 = vmatpush.bf16.msrb.mxu0 %v608_v18  ;;  %v629_v47 = vld [vmem:[%s853_s5] ss:$0 sm:$0xff] }
   0xf   :  { %427 = vmatpush.bf16.msrb.mxu2 %v625_v42  ;;  %v619_v56 = vld [vmem:[%s857_s11] sm:$0xff] }
  0x10   :  { %v630_v57 = vld [vmem:[%s856_s10] ss:$0 sm:$0xff] }
  0x11   :  { %280 = vmatpush.bf16.msra.mxu3 %v615_v19  ;;  %v631_v1 = vld [vmem:[%s858_s12] ss:$0 sm:$0xff] }
  0x12   :  { %157 = vmatpush.bf16.msra.mxu1 %v598_v9  ;;  %341 = vmatpush.bf16.msrb.mxu0 %v607_v20  ;;  %v632_v6 = vld [vmem:[%s859_s13] ss:$0 sm:$0xff] }
  0x13   :  { %428 = vmatpush.bf16.msrb.mxu2 %v624_v43 }
  0x15   :  { %281 = vmatpush.bf16.msra.mxu3 %v614_v21 }
  0x16   :  { %158 = vmatpush.bf16.msra.mxu1 %v597_v10  ;;  %342 = vmatpush.bf16.msrb.mxu0 %v606_v22  ;;  %v633_v10 = vld [vmem:[#allocation2] ss:$0 sm:$0xff] }
  0x17   :  { %429 = vmatpush.bf16.msrb.mxu2 %v623_v44 }
  0x19   :  { %282 = vmatpush.bf16.msra.mxu3 %v613_v23 }
  0x1a   :  { %159 = vmatpush.bf16.msra.mxu1 %v596_v11  ;;  %343 = vmatpush.bf16.msrb.mxu0 %v605_v24 }
  0x1b   :  { %430 = vmatpush.bf16.msrb.mxu2 %v622_v45 }
  0x1d   :  { %283 = vmatpush.bf16.msra.mxu3 %v612_v26 }
  0x1e   :  { %160 = vmatpush.bf16.msra.mxu1 %v595_v12  ;;  %344 = vmatpush.bf16.msrb.mxu0 %v604_v39 }
  0x1f   :  { %431 = vmatpush.bf16.msrb.mxu2 %v621_v46 }
  0x21   :  { %284 = vmatpush.bf16.msra.mxu3 %v611_v29 }
  0x22   :  { %345 = vmatpush.bf16.msrb.mxu0 %v603_v40 }
  0x23   :  { %432 = vmatpush.bf16.msrb.mxu2 %v620_v55 }
  0x27   :  { %433 = vmatpush.bf16.msrb.mxu2 %v619_v56 }
  0x82   :  { %v79_v27 = vpop.f32.mrf.mxu0 }
  0x83   :  { %v80_v28 = vadd.f32 %v627_v25, %v79_v27 }
  0x85   :  { %v83_v30 = vmax.f32 %v80_v28, 0.0 }
  0x87   :  { %v84_v32 = vpack.c.bf16 %v83_v30, %v83_v30 }
  0x89   :  { %161 = vmatmul.bf16.vlgmr.msra.gmra.mxu1 %v84_v32 }
  0x8a   :  { %v191_v33 = vpop.f32.mrf.mxu2  ;;  %v81_v34 = vpop.f32.mrf.mxu0 }
  0x8b   :  { %v192_v35 = vadd.f32 %v628_v31, %v191_v33 }
  0x8d   :  { %v195_v36 = vmax.f32 %v192_v35, 0.0 }
  0x8f   :  { %v196_v37 = vpack.c.bf16 %v195_v36, %v195_v36 }
  0x91   :  { %285 = vmatmul.bf16.vlgmr.msra.gmra.mxu3 %v196_v37 }
  0x92   :  { %v193_v38 = vpop.f32.mrf.mxu2 }
 0x106   :  { %v162_v48 = vpop.f32.mrf.mxu1 }
 0x107   :  { %v163_v49 = vadd.f32 %v629_v47, %v162_v48 }
 0x109   :  { %v166_v50 = vmax.f32 %v163_v49, 0.0 }
 0x10b   :  { %v167_v51 = vpack.c.bf16 %v166_v50, %v166_v50 }
 0x10d   :  { %346 = vmatmul.bf16.vlgmr.msrb.gmra.mxu0 %v167_v51 }
 0x10e   :  { %v164_v52 = vpop.f32.mrf.mxu1 }
 0x114   :  { %v286_v53 = vpop.f32.mrf.mxu3 }
 0x11c   :  { %v288_v54 = vpop.f32.mrf.mxu3 }
 0x18a   :  { %v347_v58 = vpop.f32.mrf.mxu0 }
 0x18b   :  { %v348_v59 = vadd.f32 %v347_v58, %v286_v53 }
 0x18d   :  { %v355_v60 = vadd.f32 %v630_v57, %v348_v59 }
 0x18f   :  { %v356_v61 = vmax.f32 %v355_v60, 0.0 }
 0x191   :  { %v357_v62 = vpack.c.bf16 %v356_v61, %v356_v61 }
 0x192   :  { %v349_v63 = vpop.f32.mrf.mxu0 }
 0x193   :  { %434 = vmatmul.bf16.vlgmr.msrb.gmra.mxu2 %v357_v62 }
 0x216   :  { %v435_v2 = vpop.f32.mrf.mxu2 }
 0x217   :  { %v436_v3 = vadd.f32 %v631_v1, %v435_v2 }
 0x219   :  { %v439_v4 = vmax.f32 %v436_v3, 0.0 }
 0x21b   :  { %v440_v5 = vpack.c.bf16 %v439_v4, %v439_v4 }
 0x21d   :  { %v441_v7 = vunpack.c.l.bf16 %v440_v5 }
 0x21e   :  { %v437_v8 = vpop.f32.mrf.mxu2 }
 0x21f   :  { %v446_v9 = vmul.f32 %v632_v6, %v441_v7 }
 0x221   :  { %447 = vadd.xlane.f32.xlu0 %v446_v9 }
 0x294   :  { %v448_v11 = vpop.xlane.xlu0 %447 }
 0x295   :  { %v453_v12 = vadd.f32 %v633_v10, %v448_v11 }
 0x297   :  { %455 = vst.msk [vmem:[%s861_s15] sm:$0xff] %vm454_vm3, %v453_v12 }

</bundles_post_ra>
